<compile_context>
chip_gen: v7x
topology: tpu7x:2x2x1
jax: 0.10.0
libtpu: 0.0.40
codegen_flags: <defaults>
</compile_context>

<pallas_src>
import math

import jax
import jax.numpy as jnp
from jax.experimental import pallas as pl
from jax.experimental.pallas import tpu as pltpu

# Above the v5e/v6e scoped-VMEM defaults, below v7x's 64 MiB physical VMEM.
_VMEM_LIMIT_BYTES = 48 * 1024 * 1024
_MATMUL_VMEM_BUDGET = 40 * 1024 * 1024


# ----------------------------------------------------------------------------
# Tiled bf16 matmul kernel with f32 accumulator (FC layers)
# ----------------------------------------------------------------------------
def _matmul_kernel(a_ref, b_ref, o_ref, acc_ref):
    k = pl.program_id(2)

    @pl.when(k == 0)
    def _():
        acc_ref[...] = jnp.zeros_like(acc_ref)

    acc_ref[...] += jnp.dot(a_ref[...], b_ref[...], preferred_element_type=jnp.float32)

    @pl.when(k == pl.num_programs(2) - 1)
    def _():
        o_ref[...] = acc_ref[...].astype(o_ref.dtype)


def pallas_matmul(a, b, out_dtype=jnp.float32):
    """a: [M, K] @ b: [K, N] -> [M, N]. Operands cast to bf16 for the MXU."""
    M, K = a.shape
    K2, N = b.shape
    assert K == K2
    a = a.astype(jnp.bfloat16)
    b = b.astype(jnp.bfloat16)

    tn = 256 if N % 256 == 0 else (128 if N % 128 == 0 else N)
    tk = K
    for c in (2048, 1024, 512):
        if K % c == 0 and K > c:
            tk = c
            break

    out_bytes = jnp.dtype(out_dtype).itemsize

    def vmem_bytes(tm_):
        # double-buffered bf16 inputs + double-buffered output + f32 accumulator
        return 2 * 2 * (tm_ * tk + tk * tn) + 2 * out_bytes * tm_ * tn + 4 * tm_ * tn

    tm = None
    for c in (2048, 1024, 512, 256, 128, 64, 32, 16, 8):
        if M % c == 0 and vmem_bytes(c) <= _MATMUL_VMEM_BUDGET:
            tm = c
            break
    if tm is None:
        tm = M  # small / awkward M: single block along M (guarded below)
        assert vmem_bytes(tm) <= _MATMUL_VMEM_BUDGET, (
            f"pallas_matmul: M={M} does not tile under the VMEM budget")

    grid = (M // tm, N // tn, K // tk)
    return pl.pallas_call(
        _matmul_kernel,
        out_shape=jax.ShapeDtypeStruct((M, N), out_dtype),
        grid=grid,
        in_specs=[
            pl.BlockSpec((tm, tk), lambda i, j, k: (i, k)),
            pl.BlockSpec((tk, tn), lambda i, j, k: (k, j)),
        ],
        out_specs=pl.BlockSpec((tm, tn), lambda i, j, k: (i, j)),
        scratch_shapes=[pltpu.VMEM((tm, tn), jnp.float32)],
        compiler_params=pltpu.CompilerParams(
            dimension_semantics=("parallel", "parallel", "arbitrary"),
            vmem_limit_bytes=_VMEM_LIMIT_BYTES,
        ),
    )(a, b)


# ----------------------------------------------------------------------------
# conv1 (Cin=2) + CuLIF: tiny tap gather in XLA, matmul + temporal scan fused
# ----------------------------------------------------------------------------
def _im2col_3x3(x):
    """x: [T, B, H, W, C] -> patches [T, B, H*W, 9*C] ((dh, dw, Cin) column order)."""
    T, B, H, W, C = x.shape
    xp = jnp.pad(x, ((0, 0), (0, 0), (1, 1), (1, 1), (0, 0)))
    cols = [xp[:, :, dh:dh + H, dw:dw + W, :] for dh in range(3) for dw in range(3)]
    return jnp.concatenate(cols, axis=-1).reshape(T, B, H * W, 9 * C)


def _make_matmul_culif_kernel(alpha, beta, theta):
    def kernel(p_ref, w_ref, s_ref, i_ref, v_ref):
        t = pl.program_id(1)

        @pl.when(t == 0)
        def _():
            i_ref[...] = jnp.zeros_like(i_ref)
            v_ref[...] = jnp.zeros_like(v_ref)

        cur = jnp.dot(p_ref[...], w_ref[...], preferred_element_type=jnp.float32)
        i_new = beta * i_ref[...] + cur
        h = alpha * v_ref[...] + i_new
        s = (h >= theta).astype(jnp.float32)
        i_ref[...] = i_new
        v_ref[...] = h - theta * s
        s_ref[...] = s.astype(s_ref.dtype)

    return kernel


def conv1_culif(x, w, alpha, beta, theta):
    """x: [T, B, H, W, Cin] bf16 spikes; w: [9*Cin, Cout]. Fused matmul + CuLIF scan."""
    T, B, H, W, C = map(int, x.shape)
    Cout = int(w.shape[1])
    K = 9 * C
    HW = H * W
    patches = _im2col_3x3(x.astype(jnp.bfloat16))            # [T, B, HW, 9*Cin]
    out = pl.pallas_call(
        _make_matmul_culif_kernel(alpha, beta, theta),
        out_shape=jax.ShapeDtypeStruct((T, B, HW, Cout), jnp.bfloat16),
        grid=(B, T),
        in_specs=[
            pl.BlockSpec((None, None, HW, K), lambda b, t: (t, b, 0, 0)),
            pl.BlockSpec((K, Cout), lambda b, t: (0, 0)),
        ],
        out_specs=pl.BlockSpec((None, None, HW, Cout), lambda b, t: (t, b, 0, 0)),
        scratch_shapes=[pltpu.VMEM((HW, Cout), jnp.float32),
                        pltpu.VMEM((HW, Cout), jnp.float32)],
        compiler_params=pltpu.CompilerParams(
            dimension_semantics=("parallel", "arbitrary"),
            vmem_limit_bytes=_VMEM_LIMIT_BYTES,
        ),
    )(patches, w.astype(jnp.bfloat16))
    return out.reshape(T, B, H, W, Cout)


# ----------------------------------------------------------------------------
# Fused Conv3x3 + CuLIF + MaxPool(2) + CuLIF (conv_layers[1..2] and [3..4])
# ----------------------------------------------------------------------------
def _make_conv_culif_pool_culif_kernel(H, W, Cin, Cout, alpha, beta, theta):
    HW = H * W
    Hh, Wh = H // 2, W // 2

    def kernel(x_ref, w_ref, out_ref, iA_ref, vA_ref, iB_ref, vB_ref, pe_ref, po_ref):
        t = pl.program_id(1)

        @pl.when(t == 0)
        def _():
            iA_ref[...] = jnp.zeros_like(iA_ref)
            vA_ref[...] = jnp.zeros_like(vA_ref)
            iB_ref[...] = jnp.zeros_like(iB_ref)
            vB_ref[...] = jnp.zeros_like(vB_ref)

        # -- 3x3 conv: per-tap [HW, Cin] @ [Cin, Cout] MXU accumulation (no im2col) --
        cur = jnp.zeros((HW, Cout), jnp.float32)
        for dh in range(3):
            for dw in range(3):
                xt = x_ref[dh:dh + H, dw:dw + W, :].reshape(HW, Cin)
                cur = cur + jnp.dot(xt, w_ref[3 * dh + dw],
                                    preferred_element_type=jnp.float32)

        # -- CuLIF (conv layer neuron): state persists across the T grid axis --
        iA_new = beta * iA_ref[...] + cur
        hA = alpha * vA_ref[...] + iA_new
        sA = (hA >= theta).astype(jnp.float32)
        iA_ref[...] = iA_new
        vA_ref[...] = hA - theta * sA

        # -- 2x2 stride-2 max-pool in VMEM: even/odd H rows via a free major-dim
        #    split, even/odd W columns via sublane-strided reads of the staging refs --
        s4 = sA.reshape(Hh, 2, W, Cout)
        pe_ref[...] = s4[:, 0].astype(jnp.bfloat16)
        po_ref[...] = s4[:, 1].astype(jnp.bfloat16)
        p00 = pe_ref[:, pl.ds(0, Wh, stride=2), :]
        p01 = pe_ref[:, pl.ds(1, Wh, stride=2), :]
        p10 = po_ref[:, pl.ds(0, Wh, stride=2), :]
        p11 = po_ref[:, pl.ds(1, Wh, stride=2), :]
        pooled = jnp.maximum(jnp.maximum(p00, p01), jnp.maximum(p10, p11))

        # -- CuLIF (pool layer neuron) --
        iB_new = beta * iB_ref[...] + pooled.astype(jnp.float32)
        hB = alpha * vB_ref[...] + iB_new
        sB = (hB >= theta).astype(jnp.float32)
        iB_ref[...] = iB_new
        vB_ref[...] = hB - theta * sB
        out_ref[...] = sB.astype(out_ref.dtype)

    return kernel


def conv_culif_pool_culif(x, w, alpha, beta, theta):
    """x: [T, B, H, W, Cin] bf16 spikes; w: [9, Cin, Cout].
    Returns pooled spikes [T, B, H//2, W//2, Cout] bf16."""
    T, B, H, W, Cin = map(int, x.shape)
    Cout = int(w.shape[2])
    assert H % 2 == 0 and W % 2 == 0 and W % 8 == 0, (
        "fused conv/pool kernel needs even H, W and W % 8 == 0")
    Hh, Wh = H // 2, W // 2
    xp = jnp.pad(x.astype(jnp.bfloat16), ((0, 0), (0, 0), (1, 1), (1, 1), (0, 0)))
    return pl.pallas_call(
        _make_conv_culif_pool_culif_kernel(H, W, Cin, Cout, alpha, beta, theta),
        out_shape=jax.ShapeDtypeStruct((T, B, Hh, Wh, Cout), jnp.bfloat16),
        grid=(B, T),
        in_specs=[
            pl.BlockSpec((None, None, H + 2, W + 2, Cin), lambda b, t: (t, b, 0, 0, 0)),
            pl.BlockSpec((9, Cin, Cout), lambda b, t: (0, 0, 0)),
        ],
        out_specs=pl.BlockSpec((None, None, Hh, Wh, Cout),
                               lambda b, t: (t, b, 0, 0, 0)),
        scratch_shapes=[
            pltpu.VMEM((H * W, Cout), jnp.float32),   # I state (conv neuron)
            pltpu.VMEM((H * W, Cout), jnp.float32),   # V state (conv neuron)
            pltpu.VMEM((Hh, Wh, Cout), jnp.float32),  # I state (pool neuron)
            pltpu.VMEM((Hh, Wh, Cout), jnp.float32),  # V state (pool neuron)
            pltpu.VMEM((Hh, W, Cout), jnp.bfloat16),  # even-H spike rows (pool staging)
            pltpu.VMEM((Hh, W, Cout), jnp.bfloat16),  # odd-H spike rows (pool staging)
        ],
        compiler_params=pltpu.CompilerParams(
            dimension_semantics=("parallel", "arbitrary"),
            vmem_limit_bytes=_VMEM_LIMIT_BYTES,
        ),
    )(xp, w.astype(jnp.bfloat16))


# ----------------------------------------------------------------------------
# Recurrent CuLIF FC kernel (AddLinearRecurrentContainer): per step the neuron
# receives Linear_ff(x[t]) + s[t-1] @ W_rec; the recurrent matmul is in-kernel
# and the I/V state stays in local values (vregs) across the unrolled T loop.
# ----------------------------------------------------------------------------
def _make_rec_culif_kernel(alpha, beta, theta):
    def kernel(cur_ref, wrec_ref, s_ref):
        T, B, H = cur_ref.shape
        wrec = wrec_ref[...]                     # bf16 (H, H), hoisted out of the loop
        cur_i = jnp.zeros((B, H), jnp.float32)
        v = jnp.zeros((B, H), jnp.float32)
        s_prev = jnp.zeros((B, H), jnp.bfloat16)
        for t in range(T):                       # static unroll over time
            rec = jnp.dot(s_prev, wrec, preferred_element_type=jnp.float32)
            cur_i = beta * cur_i + cur_ref[t] + rec
            h = alpha * v + cur_i
            s = (h >= theta).astype(jnp.float32)
            s_ref[t] = s.astype(s_ref.dtype)
            v = h - theta * s
            s_prev = s.astype(jnp.bfloat16)
    return kernel


def rec_culif_fc(cur_ff, w_rec, alpha, beta, theta):
    """cur_ff: [T, B, H] feedforward current (f32), w_rec: [H, H]. Returns bf16 spikes."""
    T, B, H = map(int, cur_ff.shape)
    return pl.pallas_call(
        _make_rec_culif_kernel(alpha, beta, theta),
        out_shape=jax.ShapeDtypeStruct((T, B, H), jnp.bfloat16),
        grid=(1,),
        in_specs=[
            pl.BlockSpec((T, B, H), lambda i: (0, 0, 0)),
            pl.BlockSpec((H, H), lambda i: (0, 0)),
        ],
        out_specs=pl.BlockSpec((T, B, H), lambda i: (0, 0, 0)),
        compiler_params=pltpu.CompilerParams(
            dimension_semantics=("arbitrary",),
            vmem_limit_bytes=_VMEM_LIMIT_BYTES,
        ),
    )(cur_ff.astype(jnp.float32), w_rec.astype(jnp.bfloat16))


# ----------------------------------------------------------------------------
# Final FC CuLIF: spikes + pre-reset membrane h_seq, state kept in local values
# ----------------------------------------------------------------------------
def _make_culif_fc_h_kernel(alpha, beta, theta):
    def kernel(cur_ref, s_ref, h_ref):
        T = cur_ref.shape[0]
        cur_i = jnp.zeros(cur_ref.shape[1:], jnp.float32)
        v = jnp.zeros_like(cur_i)
        for t in range(T):                       # static unroll over time
            cur_i = beta * cur_i + cur_ref[t]
            h = alpha * v + cur_i
            s = (h >= theta).astype(jnp.float32)
            s_ref[t] = s.astype(s_ref.dtype)
            h_ref[t] = h
            v = h - theta * s
    return kernel


def culif_fc_h(cur, alpha, beta, theta):
    T, B, H = map(int, cur.shape)
    return pl.pallas_call(
        _make_culif_fc_h_kernel(alpha, beta, theta),
        out_shape=(jax.ShapeDtypeStruct((T, B, H), jnp.bfloat16),
                   jax.ShapeDtypeStruct((T, B, H), jnp.float32)),
        grid=(1,),
        in_specs=[pl.BlockSpec((T, B, H), lambda i: (0, 0, 0))],
        out_specs=(pl.BlockSpec((T, B, H), lambda i: (0, 0, 0)),
                   pl.BlockSpec((T, B, H), lambda i: (0, 0, 0))),
        compiler_params=pltpu.CompilerParams(
            dimension_semantics=("arbitrary",),
            vmem_limit_bytes=_VMEM_LIMIT_BYTES,
        ),
    )(cur.astype(jnp.float32))


# ----------------------------------------------------------------------------
# Spike2Time (approximation) and full forward pass
# ----------------------------------------------------------------------------
def spike2time(spikes_bot, h_bot):
    # spikes_bot, h_bot: [B, out, T]. Time-to-first-spike; no spike -> T.
    # TODO(synk): h_bot is unused; the real Spike2Time may interpolate with membrane.
    T = spikes_bot.shape[-1]
    t_idx = jnp.arange(T, dtype=jnp.float32)
    times = jnp.where(spikes_bot > 0, t_idx, jnp.float32(T))
    return times.min(axis=-1)


def dvs_gesture_net_forward(x, params, is_spike_train=False):
    """x: [B, C, H, W, T] (PyTorch input convention before the permute)."""
    # channels-last, time-major: [T, B, H, W, C]; spikes stored as bf16 (exactly 0/1)
    x = jnp.transpose(x, (4, 0, 2, 3, 1)).astype(jnp.bfloat16)
    T, B = int(x.shape[0]), int(x.shape[1])
    a1, b1, th1 = params["neuron1"]
    a2, b2, th2 = params["neuron2"]

    # conv_layers[0]: Conv(C->64, lane-padded to 128) + CuLIF (fused scan)
    x = conv1_culif(x, params["w_conv1"], a1, b1, th1)
    # conv_layers[1] + [2]: Conv(64->128) + CuLIF + MaxPool(2) + CuLIF (one fused kernel)
    x = conv_culif_pool_culif(x, params["w_conv2"], a1, b1, th1)
    # conv_layers[3] + [4]: Conv(128->128) + CuLIF + MaxPool(2) + CuLIF (one fused kernel)
    x = conv_culif_pool_culif(x, params["w_conv3"], a1, b1, th1)

    # flatten (H/4, W/4, C) -> features (channels-last flatten; w_fc1 matches)
    x = x.reshape(T, B, -1)

    # fc_layers[0]: recurrent SpikeFC (Linear + CuLIF with linear recurrent feedback)
    cur = pallas_matmul(x.reshape(T * B, -1), params["w_fc1"]).reshape(T, B, 128)
    x = rec_culif_fc(cur, params["w_rec1"], a2, b2, th2)

    # fc_layers[1]: SpikeFC(128 -> out_size, lane-padded to 128) with store_v_seq
    cur = pallas_matmul(x.reshape(T * B, 128), params["w_fc2"]).reshape(T, B, 128)
    s, h_seq = culif_fc_h(cur, a2, b2, th2)

    out_size = params["out_size"]
    s = s[..., :out_size].astype(jnp.float32)        # drop the lane padding
    h_seq = h_seq[..., :out_size]

    spikes_bot = jnp.transpose(s, (1, 2, 0))          # [B, out, T]
    h_bot = jnp.transpose(h_seq, (1, 2, 0))           # [B, out, T]
    output_times = spike2time(spikes_bot, h_bot)      # [B, out]
    firing_rate = s.mean(0)                           # [B, out]

    outputs = [output_times, firing_rate]
    if is_spike_train:
        outputs.append(spikes_bot)
    return outputs


# ----------------------------------------------------------------------------
# Deterministic parameter construction (Xavier-uniform like the PyTorch init)
# ----------------------------------------------------------------------------
def _xavier(key, shape, fan_in, fan_out):
    bound = math.sqrt(6.0 / (fan_in + fan_out))
    return jax.random.uniform(key, shape, jnp.float32, -bound, bound)


def make_params(key, in_channels, H, W, out_size, neuron_params1, neuron_params2):
    ks = jax.random.split(key, 6)
    c1, c2 = 64, 128
    fc_in = (H // 4) * (W // 4) * c2

    def decay(npar):
        return (math.exp(-1.0 / npar["tau_m"]),
                math.exp(-1.0 / npar["tau_s"]),
                float(npar["theta"]))

    # conv1: [(dh, dw, Cin) flattened, Cout] with Cout padded 64 -> 128 (zero columns)
    w1 = _xavier(ks[0], (9 * in_channels, c1), 9 * in_channels, 9 * c1)
    w1 = jnp.pad(w1, ((0, 0), (0, c2 - c1)))
    # conv2/conv3: per-tap [9, Cin, Cout]; conv2 Cin rows 64..127 are zero padding
    w2 = _xavier(ks[1], (9, c1, c2), 9 * c1, 9 * c2)
    w2 = jnp.pad(w2, ((0, 0), (0, c2 - c1), (0, 0)))
    w3 = _xavier(ks[2], (9, c2, c2), 9 * c2, 9 * c2)
    w_fc1 = _xavier(ks[3], (fc_in, 128), fc_in, 128)
    w_rec1 = _xavier(ks[4], (128, 128), 128, 128)
    w_fc2 = _xavier(ks[5], (128, out_size), 128, out_size)
    w_fc2 = jnp.pad(w_fc2, ((0, 0), (0, 128 - out_size)))       # out 11 -> 128

    bf = jnp.bfloat16
    return {
        "w_conv1": w1.astype(bf),
        "w_conv2": w2.astype(bf),
        "w_conv3": w3.astype(bf),
        "w_fc1": w_fc1.astype(bf),
        "w_rec1": w_rec1.astype(bf),
        "w_fc2": w_fc2.astype(bf),
        "neuron1": decay(neuron_params1),
        "neuron2": decay(neuron_params2),
        "out_size": out_size,
    }


if __name__ == "__main__":
    key = jax.random.PRNGKey(0)
    B, C, H, W, T = 2, 2, 16, 16, 8
    out_size = 11

    neuron_params1 = {"tau_m": 20.0, "tau_s": 5.0, "theta": 1.0}
    neuron_params2 = {"tau_m": 20.0, "tau_s": 5.0, "theta": 1.0}

    kx, kp = jax.random.split(key)
    # DVS event tensor: binary spikes, shape [B, C, H, W, T]
    x = (jax.random.uniform(kx, (B, C, H, W, T)) < 0.3).astype(jnp.float32)

    params = make_params(kp, C, H, W, out_size, neuron_params1, neuron_params2)

    output_times, firing_rate = dvs_gesture_net_forward(x, params)
    jax.block_until_ready(output_times)
    jax.block_until_ready(firing_rate)

    assert output_times.shape == (B, out_size)
    assert firing_rate.shape == (B, out_size)
    print("KERNEL_OK")
</pallas_src>

<mosaic_0001>
module attributes {stable_mosaic.version = 11 : i64} {
  func.func @kernel(%arg0: i32, %arg1: i32, %arg2: memref<1x1x256x18xbf16, #tpu.memory_space<vmem>>, %arg3: memref<18x128xbf16, #tpu.memory_space<vmem>>, %arg4: memref<1x1x256x128xbf16, #tpu.memory_space<vmem>>, %arg5: memref<256x128xf32, #tpu.memory_space<vmem>>, %arg6: memref<256x128xf32, #tpu.memory_space<vmem>>) attributes {dimension_semantics = [#tpu.dimension_semantics<parallel>, #tpu.dimension_semantics<arbitrary>], iteration_bounds = array<i64: 2, 8>, scalar_prefetch = 0 : i64, scratch_operands = 2 : i64, tpu.core_type = #tpu.core_type<tc>, window_params = [{transform_indices = @transform_0, window_bounds = array<i64: 1, 1, 256, 18>}, {pipeline_mode = #tpu.pipeline_mode<synchronous>, transform_indices = @transform_1, window_bounds = array<i64: 18, 128>}, {transform_indices = @transform_2, window_bounds = array<i64: 1, 1, 256, 128>}]} {
    %c0_i32 = arith.constant 0 : i32
    %0 = arith.cmpi eq, %arg1, %c0_i32 : i32
    %1 = arith.extui %0 : i1 to i32
    %c0_i32_0 = arith.constant 0 : i32
    %2 = arith.cmpi ne, %1, %c0_i32_0 : i32
    scf.if %2 {
      %cst_22 = arith.constant 0.000000e+00 : f32
      %28 = vector.broadcast %cst_22 : f32 to vector<256x128xf32>
      %c0_23 = arith.constant 0 : index
      %c0_24 = arith.constant 0 : index
      %29 = vector.load %arg5[%c0_23, %c0_24] : memref<256x128xf32, #tpu.memory_space<vmem>>, vector<256x128xf32>
      tpu.vector_store %arg5[%c0_23, %c0_24], %28 {strides = array<i32>} : memref<256x128xf32, #tpu.memory_space<vmem>>, vector<256x128xf32>,
      %cst_25 = arith.constant 0.000000e+00 : f32
      %30 = vector.broadcast %cst_25 : f32 to vector<256x128xf32>
      %c0_26 = arith.constant 0 : index
      %c0_27 = arith.constant 0 : index
      %31 = vector.load %arg6[%c0_26, %c0_27] : memref<256x128xf32, #tpu.memory_space<vmem>>, vector<256x128xf32>
      tpu.vector_store %arg6[%c0_26, %c0_27], %30 {strides = array<i32>} : memref<256x128xf32, #tpu.memory_space<vmem>>, vector<256x128xf32>,
    } else {
    }
    %c0 = arith.constant 0 : index
    %c0_1 = arith.constant 0 : index
    %c0_2 = arith.constant 0 : index
    %c0_3 = arith.constant 0 : index
    %3 = vector.load %arg2[%c0, %c0_1, %c0_2, %c0_3] : memref<1x1x256x18xbf16, #tpu.memory_space<vmem>>, vector<1x1x256x18xbf16>
    %4 = vector.shape_cast %3 : vector<1x1x256x18xbf16> to vector<256x18xbf16>
    %c0_4 = arith.constant 0 : index
    %c0_5 = arith.constant 0 : index
    %5 = vector.load %arg3[%c0_4, %c0_5] : memref<18x128xbf16, #tpu.memory_space<vmem>>, vector<18x128xbf16>
    %cst = arith.constant dense<0.000000e+00> : vector<256x128xf32>
    %6 = tpu.matmul %4, %5, %cst {dimension_numbers = #tpu.dot_dimension_numbers<[1], [0], [0], [1], [0, 0, 1, 1], [], []>} : vector<256x18xbf16>, vector<18x128xbf16>, vector<256x128xf32> -> vector<256x128xf32>
    %c0_6 = arith.constant 0 : index
    %c0_7 = arith.constant 0 : index
    %7 = vector.load %arg5[%c0_6, %c0_7] : memref<256x128xf32, #tpu.memory_space<vmem>>, vector<256x128xf32>
    %cst_8 = arith.constant 0.818730771 : f32
    %8 = vector.broadcast %cst_8 : f32 to vector<256x128xf32>
    %9 = arith.mulf %8, %7 : vector<256x128xf32>
    %10 = arith.addf %9, %6 : vector<256x128xf32>
    %c0_9 = arith.constant 0 : index
    %c0_10 = arith.constant 0 : index
    %11 = vector.load %arg6[%c0_9, %c0_10] : memref<256x128xf32, #tpu.memory_space<vmem>>, vector<256x128xf32>
    %cst_11 = arith.constant 0.951229453 : f32
    %12 = vector.broadcast %cst_11 : f32 to vector<256x128xf32>
    %13 = arith.mulf %12, %11 : vector<256x128xf32>
    %14 = arith.addf %13, %10 : vector<256x128xf32>
    %cst_12 = arith.constant 1.000000e+00 : f32
    %15 = vector.broadcast %cst_12 : f32 to vector<256x128xf32>
    %16 = arith.cmpf oge, %14, %15 : vector<256x128xf32>
    %17 = arith.extui %16 : vector<256x128xi1> to vector<256x128xi32>
    %18 = arith.sitofp %17 : vector<256x128xi32> to vector<256x128xf32>
    %c0_13 = arith.constant 0 : index
    %c0_14 = arith.constant 0 : index
    %19 = vector.load %arg5[%c0_13, %c0_14] : memref<256x128xf32, #tpu.memory_space<vmem>>, vector<256x128xf32>
    tpu.vector_store %arg5[%c0_13, %c0_14], %10 {strides = array<i32>} : memref<256x128xf32, #tpu.memory_space<vmem>>, vector<256x128xf32>,
    %cst_15 = arith.constant 1.000000e+00 : f32
    %20 = vector.broadcast %cst_15 : f32 to vector<256x128xf32>
    %21 = arith.mulf %20, %18 : vector<256x128xf32>
    %22 = arith.subf %14, %21 : vector<256x128xf32>
    %c0_16 = arith.constant 0 : index
    %c0_17 = arith.constant 0 : index
    %23 = vector.load %arg6[%c0_16, %c0_17] : memref<256x128xf32, #tpu.memory_space<vmem>>, vector<256x128xf32>
    tpu.vector_store %arg6[%c0_16, %c0_17], %22 {strides = array<i32>} : memref<256x128xf32, #tpu.memory_space<vmem>>, vector<256x128xf32>,
    %24 = arith.truncf %18 : vector<256x128xf32> to vector<256x128xbf16>
    %c0_18 = arith.constant 0 : index
    %c0_19 = arith.constant 0 : index
    %c0_20 = arith.constant 0 : index
    %c0_21 = arith.constant 0 : index
    %25 = vector.load %arg4[%c0_18, %c0_19, %c0_20, %c0_21] : memref<1x1x256x128xbf16, #tpu.memory_space<vmem>>, vector<1x1x256x128xbf16>
    %26 = vector.shape_cast %25 : vector<1x1x256x128xbf16> to vector<256x128xbf16>
    %27 = vector.shape_cast %24 : vector<256x128xbf16> to vector<1x1x256x128xbf16>
    tpu.vector_store %arg4[%c0_18, %c0_19, %c0_20, %c0_21], %27 {strides = array<i32>} : memref<1x1x256x128xbf16, #tpu.memory_space<vmem>>, vector<1x1x256x128xbf16>,
    return
  }
  func.func @transform_0(%arg0: i32, %arg1: i32) -> (i32, i32, i32, i32) {
    %c0_i32 = arith.constant 0 : i32
    %c0_i32_0 = arith.constant 0 : i32
    %c0_i32_1 = arith.constant 0 : i32
    return %arg1, %arg0, %c0_i32, %c0_i32_0 : i32, i32, i32, i32
  }
  func.func @transform_1(%arg0: i32, %arg1: i32) -> (i32, i32) {
    %c0_i32 = arith.constant 0 : i32
    %c0_i32_0 = arith.constant 0 : i32
    %c0_i32_1 = arith.constant 0 : i32
    return %c0_i32, %c0_i32_0 : i32, i32
  }
  func.func @transform_2(%arg0: i32, %arg1: i32) -> (i32, i32, i32, i32) {
    %c0_i32 = arith.constant 0 : i32
    %c0_i32_0 = arith.constant 0 : i32
    %c0_i32_1 = arith.constant 0 : i32
    return %arg1, %arg0, %c0_i32, %c0_i32_0 : i32, i32, i32, i32
  }
}

</mosaic_0001>

<bundles_post_ra>
// kernel: tpu_custom_call.1
= control target key start
LH: loop header
LB: loop body
LE: loop exit
PB: predicated region body
PF: predicated region fallthrough
CT: control target
= control target key end

     0   :  { %7 = vsyncpa [#allocation5], 0  ;;  %s2198_s0 = inlined_call_operand.vmem [shape: bf16[8,2,256,18], index: 0, kind: input, shape index: {}]   ;;  %s2199_s1 = inlined_call_operand.vmem [shape: bf16[18,128], index: 1, kind: input, shape index: {}]   ;;  %s2200_s2 = inlined_call_operand.hbm [shape: bf16[8,2,256,128], index: 2, kind: output, shape index: {}]  }
   0x1   :  { %9 = vsyncpa [#allocation5 + $0x1], 0  ;;  %s1700_s9 = smov 0   ;;  %s1702_s10 = smov 0  }
   0x2   :  { %s1704_s11 = smov 0   ;;  %s1706_s12 = smov 0  }
   0x3   :  { %s1708_s13 = smov 0   ;;  %s1710_s14 = smov 0  }
   0x4   :  { %s1712_s15 = smov 0   ;;  %s1714_s16 = smov 0  }
   0x5 LB: > { %s1222_s17 = sadd.s32 4294967295, %s1678_s16   ;;  %s1223_s18 = sadd.s32 4294967294, %s1678_s16   ;;  %s1678_s16 = sphi %s1714_s16, %s15_s16   ;;  %s1674_s15 = sphi %s1712_s15, %s2237_s15   ;;  %s1670_s14 = sphi %s1710_s14, %s2236_s14   ;;  %s1666_s13 = sphi %s1708_s13, %s2235_s13   ;;  %s1662_s12 = sphi %s1706_s12, %s2234_s12   ;;  %s1658_s11 = sphi %s1704_s11, %s2233_s11   ;;  %s1654_s10 = sphi %s1702_s10, %s2232_s10   ;;  %s1650_s9 = sphi %s1700_s9, %s2231_s9  }
   0x6   : > { %s24_s19 = sadd.s32 1, %s1670_s14  ;;  %s27_s20 = sadd.s32 1, %s1674_s15 }
   0x7   : > { %p25_p0 = scmp.ge.s32.totalorder %s24_s19, 8  ;;  %p95_p1 = scmp.ne.s32.totalorder %s1658_s11, %s1654_s10 }
   0x8   : > { %p96_p2 = scmp.eq.s32.totalorder %s1222_s17, 15  ;;  %p101_p5 = scmp.ne.s32.totalorder %s1654_s10, %s1650_s9 }
   0x9   : > { %s2239_s19 = smov (%p25_p0, %s24_s19), 0  ;;  %s2241_s20 = smov (!%p25_p0, %s27_s20), %s1674_s15 }
   0xa   : > { %s80_s21 = ssub.s32 %s1670_s14, %s2239_s19  ;;  %p1751_p3 = por %p96_p2, %p95_p1 }
   0xb   : > { %p29_p4 = scmp.ge.s32.totalorder %s2241_s20, 2  ;;  %p102_p6 = scmp.eq.s32.totalorder %s1223_s18, 15 }
   0xc   : > { %p1226_p7 = scmp.ge.s32.totalorder %s1678_s16, 1  ;;  %p135_p9 = scmp.lt.s32.totalorder %s1678_s16, 17 }
   0xd   : > { %s2243_s20 = smov (%p29_p4, %s2241_s20), 0  ;;  %p1760_p8 = por %p102_p6, %p101_p5 }
   0xe   : > { %s81_s24 = ssub.s32 %s1674_s15, %s2243_s20  ;;  %s85_s25 = sadd.s32 1, %s1658_s11 }
   0xf   : > { %s82_s26 = sor.u32 %s81_s24, %s80_s21  ;;  %p136_p10 = pnand %p1226_p7, %p135_p9 }
  0x10   : > { %p83_p11 = scmp.eq.s32.totalorder %s82_s26, 0 }
  0x11   : > { %139 = sbr.rel (%p136_p10) target bundleno = 351 (0x15f), region = 28 }
  0x12   : > { %s1769_s27 = scalar_select %p83_p11, %s1658_s11, %s85_s25  }
  0x18   : > { %s158_s28 = sand.u32 1, %s1654_s10   ;;  %p161_p12 = scmp.lt.s32.totalorder %s1662_s12, 7 }
  0x19   : > { %s1227_s29 = sshll.u32 %s158_s28, 7  ;;  %p163_p13 = scmp.lt.s32.totalorder %s1666_s13, 1 }
  0x1a   : > { %s162_s30 = scalar_select %p161_p12, %s1662_s12, 7 }
  0x1b   : > { %s164_s3 = scalar_select %p163_p13, %s1666_s13, 1 }
  0x1c   : > { %s1229_s4 = sshll.u32 %s162_s30, 6  ;;  %s1783_s21 = scalar_lea.vmem [#allocation4], %s1227_s29 }
  0x1d   : > { %s1228_s5 = sshll.u32 %s164_s3, 5  ;;  %p1231_p0 = scmp.ne.s32.totalorder %s1662_s12, 0 }
  0x1e   : > { %s167_s6 = sadd.s32 %s1229_s4, %s1228_s5  ;;  %v1680_v0 = vmov (!%p1231_p0), 0.0  }
  0x1f   : > { %s1230_s7 = sshll.u32 %s167_s6, 2  ;;  %174 = sbr.rel (%p1231_p0) target bundleno = 63 (0x3f), region = 32  ;;  %175 = vst [vmem:[#allocation2] sm:$0xff] (!%p1231_p0), %v1680_v0  ;;  %176 = vst [vmem:[#allocation2 + $0x8] sm:$0xff] (!%p1231_p0), %v1680_v0 }
  0x20   : > { %s1781_s18 = scalar_lea.vmem %s2198_s0, %s1230_s7  ;;  %177 = vst [vmem:[#allocation2 + $0x10] sm:$0xff] (!%p1231_p0), %v1680_v0  ;;  %178 = vst [vmem:[#allocation2 + $0x18] sm:$0xff] (!%p1231_p0), %v1680_v0 }
  0x21   : > { %179 = vst [vmem:[#allocation2 + $0x20] sm:$0xff] (!%p1231_p0), %v1680_v0  ;;  %180 = vst [vmem:[#allocation2 + $0x28] sm:$0xff] (!%p1231_p0), %v1680_v0 }
  0x22   : > { %181 = vst [vmem:[#allocation2 + $0x30] sm:$0xff] (!%p1231_p0), %v1680_v0  ;;  %182 = vst [vmem:[#allocation2 + $0x38] sm:$0xff] (!%p1231_p0), %v1680_v0 }
  0x23   : > { %183 = vst [vmem:[#allocation2 + $0x40] sm:$0xff] (!%p1231_p0), %v1680_v0  ;;  %184 = vst [vmem:[#allocation2 + $0x48] sm:$0xff] (!%p1231_p0), %v1680_v0 }
  0x24   : > { %185 = vst [vmem:[#allocation2 + $0x50] sm:$0xff] (!%p1231_p0), %v1680_v0  ;;  %186 = vst [vmem:[#allocation2 + $0x58] sm:$0xff] (!%p1231_p0), %v1680_v0 }
  0x25   : > { %187 = vst [vmem:[#allocation2 + $0x60] sm:$0xff] (!%p1231_p0), %v1680_v0  ;;  %188 = vst [vmem:[#allocation2 + $0x68] sm:$0xff] (!%p1231_p0), %v1680_v0 }
  0x26   : > { %189 = vst [vmem:[#allocation2 + $0x70] sm:$0xff] %v1680_v0  ;;  %190 = vst [vmem:[#allocation2 + $0x78] sm:$0xff] %v1680_v0 }
  0x27   : > { %191 = vst [vmem:[#allocation2 + $0x80] sm:$0xff] %v1680_v0  ;;  %192 = vst [vmem:[#allocation2 + $0x88] sm:$0xff] %v1680_v0 }
  0x28   : > { %193 = vst [vmem:[#allocation2 + $0x90] sm:$0xff] %v1680_v0  ;;  %194 = vst [vmem:[#allocation2 + $0x98] sm:$0xff] %v1680_v0 }
  0x29   : > { %195 = vst [vmem:[#allocation2 + $0xa0] sm:$0xff] %v1680_v0  ;;  %196 = vst [vmem:[#allocation2 + $0xa8] sm:$0xff] %v1680_v0 }
  0x2a   : > { %197 = vst [vmem:[#allocation2 + $0xb0] sm:$0xff] %v1680_v0  ;;  %198 = vst [vmem:[#allocation2 + $0xb8] sm:$0xff] %v1680_v0 }
  0x2b   : > { %199 = vst [vmem:[#allocation2 + $0xc0] sm:$0xff] %v1680_v0  ;;  %200 = vst [vmem:[#allocation2 + $0xc8] sm:$0xff] %v1680_v0 }
  0x2c   : > { %201 = vst [vmem:[#allocation2 + $0xd0] sm:$0xff] %v1680_v0  ;;  %202 = vst [vmem:[#allocation2 + $0xd8] sm:$0xff] %v1680_v0 }
  0x2d   : > { %203 = vst [vmem:[#allocation2 + $0xe0] sm:$0xff] %v1680_v0  ;;  %204 = vst [vmem:[#allocation2 + $0xe8] sm:$0xff] %v1680_v0 }
  0x2e   : > { %205 = vst [vmem:[#allocation2 + $0xf0] sm:$0xff] %v1680_v0  ;;  %206 = vst [vmem:[#allocation2 + $0xf8] sm:$0xff] %v1680_v0 }
  0x2f   : > { %207 = vst [vmem:[#allocation3] sm:$0xff] %v1680_v0  ;;  %208 = vst [vmem:[#allocation3 + $0x8] sm:$0xff] %v1680_v0 }
  0x30   : > { %209 = vst [vmem:[#allocation3 + $0x10] sm:$0xff] %v1680_v0  ;;  %210 = vst [vmem:[#allocation3 + $0x18] sm:$0xff] %v1680_v0 }
  0x31   : > { %211 = vst [vmem:[#allocation3 + $0x20] sm:$0xff] %v1680_v0  ;;  %212 = vst [vmem:[#allocation3 + $0x28] sm:$0xff] %v1680_v0 }
  0x32   : > { %213 = vst [vmem:[#allocation3 + $0x30] sm:$0xff] %v1680_v0  ;;  %214 = vst [vmem:[#allocation3 + $0x38] sm:$0xff] %v1680_v0 }
  0x33   : > { %215 = vst [vmem:[#allocation3 + $0x40] sm:$0xff] %v1680_v0  ;;  %216 = vst [vmem:[#allocation3 + $0x48] sm:$0xff] %v1680_v0 }
  0x34   : > { %217 = vst [vmem:[#allocation3 + $0x50] sm:$0xff] %v1680_v0  ;;  %218 = vst [vmem:[#allocation3 + $0x58] sm:$0xff] %v1680_v0 }
  0x35   : > { %219 = vst [vmem:[#allocation3 + $0x60] sm:$0xff] %v1680_v0  ;;  %220 = vst [vmem:[#allocation3 + $0x68] sm:$0xff] %v1680_v0 }
  0x36   : > { %221 = vst [vmem:[#allocation3 + $0x70] sm:$0xff] %v1680_v0  ;;  %222 = vst [vmem:[#allocation3 + $0x78] sm:$0xff] %v1680_v0 }
  0x37   : > { %223 = vst [vmem:[#allocation3 + $0x80] sm:$0xff] %v1680_v0  ;;  %224 = vst [vmem:[#allocation3 + $0x88] sm:$0xff] %v1680_v0 }
  0x38   : > { %225 = vst [vmem:[#allocation3 + $0x90] sm:$0xff] %v1680_v0  ;;  %226 = vst [vmem:[#allocation3 + $0x98] sm:$0xff] %v1680_v0 }
  0x39   : > { %227 = vst [vmem:[#allocation3 + $0xa0] sm:$0xff] %v1680_v0  ;;  %228 = vst [vmem:[#allocation3 + $0xa8] sm:$0xff] %v1680_v0 }
  0x3a   : > { %229 = vst [vmem:[#allocation3 + $0xb0] sm:$0xff] %v1680_v0  ;;  %230 = vst [vmem:[#allocation3 + $0xb8] sm:$0xff] %v1680_v0 }
  0x3b   : > { %231 = vst [vmem:[#allocation3 + $0xc0] sm:$0xff] %v1680_v0  ;;  %232 = vst [vmem:[#allocation3 + $0xc8] sm:$0xff] %v1680_v0 }
  0x3c   : > { %233 = vst [vmem:[#allocation3 + $0xd0] sm:$0xff] %v1680_v0  ;;  %234 = vst [vmem:[#allocation3 + $0xd8] sm:$0xff] %v1680_v0 }
  0x3d   : > { %235 = vst [vmem:[#allocation3 + $0xe0] sm:$0xff] %v1680_v0  ;;  %236 = vst [vmem:[#allocation3 + $0xe8] sm:$0xff] %v1680_v0 }
  0x3e   : > { %237 = vst [vmem:[#allocation3 + $0xf0] sm:$0xff] %v1680_v0  ;;  %238 = vst [vmem:[#allocation3 + $0xf8] sm:$0xff] %v1680_v0 }
  0x3f PF: > { %v1566_v1 = vld [vmem:[%s2199_s1] sm:$0xff]   ;;  %vm412_vm0 = vcmask 1040384   ;;  %v1567_v2 = vld [vmem:[%s2199_s1 + $0x8] ss:$0 sps:$4 sm:$0x11]   ;;  %vm363_vm1 = vcmask 146432  }
  0x40   : > { %v1568_v3 = vld [vmem:[%s1781_s18] sm:$0xff]   ;;  %1449 = vmatprep.subr.bf16.mxu0 %v1566_v1  ;;  %1485 = vmatprep.subr.bf16.mxu1 %v1566_v1  ;;  %v414_v5 = vsel %vm412_vm0, %v1567_v2, 0  ;;  %v1570_v6 = vld [vmem:[%s1781_s18 + $0x8] sm:$0xff]   ;;  %v1572_v8 = vld [vmem:[%s1781_s18 + $0x10] sm:$0xff]   ;;  %s1331_s30 = sshll.u32 %s1666_s13, 5  ;;  %s1332_s3 = sshll.u32 %s1662_s12, 6 }
  0x41   : > { %v1569_v4 = vld [vmem:[%s1781_s18 + $0x40] sm:$0xff]   ;;  %1450 = vmatpush3.bf16.msra.mxu0 %v1566_v1  ;;  %1487 = vmatpush3.bf16.msra.mxu1 %v1566_v1  ;;  %v1571_v7 = vld [vmem:[%s1781_s18 + $0x48] sm:$0xff]   ;;  %v1573_v9 = vld [vmem:[%s1781_s18 + $0x50] sm:$0xff]   ;;  %s1134_s12 = sadd.s32 %s1332_s3, %s1331_s30  ;;  %s1137_s4 = sshll.u32 %s1783_s21, 4  ;;  %s2138_s4 = int_to_ptr.vmem [resolvable:$true] %s1137_s4 }
  0x42   : > { %1489 = vmatprep.subr.msk.bf16.mxu0 %vm412_vm0, %v1567_v2  ;;  %1490 = vmatprep.subr.msk.bf16.mxu1 %vm412_vm0, %v1567_v2  ;;  %v1574_v10 = vld [vmem:[%s1781_s18 + $0x18] sm:$0xff]   ;;  %v1576_v12 = vld [vmem:[%s1781_s18 + $0x20] sm:$0xff]   ;;  %v1578_v14 = vld [vmem:[%s1781_s18 + $0x28] sm:$0xff]   ;;  %s1333_s13 = sshll.u32 %s1134_s12, 6  ;;  %s2146_s8 = scalar_lea.sflag [#allocation5], %s158_s28 }
  0x43   : > { %1453 = vmatprep.mubr.msk.bf16.mxu0 %vm363_vm1, %v1568_v3  ;;  %1469 = vmatprep.mubr.msk.bf16.mxu1 %vm363_vm1, %v1569_v4  ;;  %v1575_v11 = vld [vmem:[%s1781_s18 + $0x58] sm:$0xff]   ;;  %v1577_v13 = vld [vmem:[%s1781_s18 + $0x60] sm:$0xff]   ;;  %v1579_v15 = vld [vmem:[%s1781_s18 + $0x68] sm:$0xff]   ;;  %s2136_s7 = scalar_lea.hbm %s2200_s2, %s1333_s13  ;;  %s1584_s17 = scalar_lea.vmem %s2138_s4, 2048 }
  0x44   : > { %v1580_v16 = vld [vmem:[%s1781_s18 + $0x30] sm:$0xff]   ;;  %v1582_v18 = vld [vmem:[%s1781_s18 + $0x38] sm:$0xff]   ;;  %v577_v22 = vld [vmem:[#allocation2] sm:$0xff]  ;;  %p1585_p1 = scmp.ne.s32.totalorder %s2138_s4, %s1584_s17 }
  0x45   : > { %1452 = vmatpush3.bf16.msra.mxu0 %v414_v5  ;;  %1488 = vmatpush3.bf16.msra.mxu1 %v414_v5  ;;  %v1581_v17 = vld [vmem:[%s1781_s18 + $0x70] sm:$0xff]   ;;  %v1583_v19 = vld [vmem:[%s1781_s18 + $0x78] sm:$0xff]   ;;  %v593_v24 = vld [vmem:[#allocation2 + $0x80] sm:$0xff]  ;;  %v1892_v29 = vmul.f32 0.8187308, %v577_v22  ;;  %s1682_s18 = smov [#allocation4]  }
  0x46   : > { %v579_v20 = vld [vmem:[#allocation2 + $0x10] sm:$0xff]  ;;  %v673_v27 = vld [vmem:[#allocation3] sm:$0xff]  ;;  %v580_v31 = vld [vmem:[#allocation2 + $0x18] sm:$0xff]  ;;  %v1896_v33 = vmul.f32 0.8187308, %v593_v24  ;;  %p1586_p2 = pnand %p1585_p1, %p1751_p3  ;;  %s1588_s24 = sshll.u32 %s1682_s18, 4  ;;  %s1589_s24 = int_to_ptr.vmem [resolvable:$false] %s1588_s24 }
  0x47   : > { %v595_v21 = vld [vmem:[#allocation2 + $0x90] sm:$0xff]  ;;  %v1888_v25 = vmul.f32 0.8187308, %v579_v20  ;;  %v689_v30 = vld [vmem:[#allocation3 + $0x80] sm:$0xff]  ;;  %v676_v34 = vld [vmem:[#allocation3 + $0x18] sm:$0xff]  ;;  %s1590_s25 = scalar_lea.vmem %s1589_s24, 4096  ;;  %p1591_p5 = scmp.lt.s32.totalorder %s2138_s4, %s1589_s24 }
  0x48   : > { %1454 = vmatmul.mubr.msk.bf16.vlgmr.msra.gmra.mrb[0].mxu0 %vm363_vm1, %v1570_v6  ;;  %1470 = vmatmul.mubr.msk.bf16.vlgmr.msra.gmra.mrb[0].mxu1 %vm363_vm1, %v1571_v7  ;;  %v675_v23 = vld [vmem:[#allocation3 + $0x10] sm:$0xff]  ;;  %v1890_v28 = vmul.f32 0.8187308, %v595_v21  ;;  %v596_v35 = vld [vmem:[#allocation2 + $0x98] sm:$0xff]  ;;  %v1900_v37 = vmul.f32 0.95122945, %v673_v27  ;;  %p1587_p4 = pneg %p1586_p2  ;;  %p1592_p6 = scmp.lt.s32.totalorder %s1590_s25, %s1584_s17 }
  0x49   : > { %1457 = vmatprep.mubr.msk.bf16.mxu0 %vm363_vm1, %v1572_v8  ;;  %1473 = vmatprep.mubr.msk.bf16.mxu1 %vm363_vm1, %v1573_v9  ;;  %v691_v26 = vld [vmem:[#allocation3 + $0x90] sm:$0xff]  ;;  %v1894_v32 = vmul.f32 0.95122945, %v675_v23  ;;  %v692_v38 = vld [vmem:[#allocation3 + $0x98] sm:$0xff]  ;;  %v1902_v39 = vmul.f32 0.95122945, %v689_v30 }
  0x4a   : > { %v1898_v36 = vmul.f32 0.95122945, %v691_v26  ;;  %v1904_v40 = vmul.f32 0.8187308, %v580_v31  ;;  %v578_v41 = vld [vmem:[#allocation2 + $0x8] sm:$0xff]  ;;  %v583_v48 = vld [vmem:[#allocation2 + $0x30] sm:$0xff]  ;;  %p1593_p7 = por %p1592_p6, %p1591_p5 }
  0x4b   : > { %v674_v42 = vld [vmem:[#allocation3 + $0x8] sm:$0xff]  ;;  %v1906_v43 = vmul.f32 0.95122945, %v676_v34  ;;  %v1908_v44 = vmul.f32 0.8187308, %v596_v35  ;;  %v599_v49 = vld [vmem:[#allocation2 + $0xb0] sm:$0xff] }
  0x4c   : > { %v594_v45 = vld [vmem:[#allocation2 + $0x88] sm:$0xff]  ;;  %v1910_v47 = vmul.f32 0.95122945, %v692_v38  ;;  %v1912_v50 = vmul.f32 0.8187308, %v578_v41  ;;  %v581_v52 = vld [vmem:[#allocation2 + $0x20] sm:$0xff]  ;;  %p1594_p9 = pnand %p1593_p7, %p1587_p4 }
  0x4d   : > { %v690_v46 = vld [vmem:[#allocation3 + $0x88] sm:$0xff]  ;;  %v1914_v51 = vmul.f32 0.95122945, %v674_v42  ;;  %v597_v53 = vld [vmem:[#allocation2 + $0xa0] sm:$0xff]  ;;  %v1916_v54 = vmul.f32 0.8187308, %v594_v45 }
  0x4e   : > { %v1918_v55 = vmul.f32 0.95122945, %v690_v46  ;;  %v679_v56 = vld [vmem:[#allocation3 + $0x30] sm:$0xff]  ;;  %v1920_v58 = vmul.f32 0.8187308, %v583_v48  ;;  %v677_v60 = vld [vmem:[#allocation3 + $0x20] sm:$0xff] }
  0x4f   : > { %v695_v57 = vld [vmem:[#allocation3 + $0xb0] sm:$0xff]  ;;  %v1922_v59 = vmul.f32 0.8187308, %v599_v49  ;;  %v693_v61 = vld [vmem:[#allocation3 + $0xa0] sm:$0xff]  ;;  %v1924_v62 = vmul.f32 0.8187308, %v581_v52 }
  0x50   : > { %1458 = vmatmul.mubr.msk.bf16.gmra.mrb[4].mxu0 %vm363_vm1, %v1574_v10  ;;  %1474 = vmatmul.mubr.msk.bf16.gmra.mrb[4].mxu1 %vm363_vm1, %v1575_v11  ;;  %v1926_v63 = vmul.f32 0.8187308, %v597_v53  ;;  %v584_v0 = vld [vmem:[#allocation2 + $0x38] sm:$0xff]  ;;  %v1928_v2 = vmul.f32 0.95122945, %v679_v56  ;;  %v582_v5 = vld [vmem:[#allocation2 + $0x28] sm:$0xff] }
  0x51   : > { %1461 = vmatprep.mubr.msk.bf16.mxu0 %vm363_vm1, %v1576_v12  ;;  %1477 = vmatprep.mubr.msk.bf16.mxu1 %vm363_vm1, %v1577_v13  ;;  %v680_v1 = vld [vmem:[#allocation3 + $0x38] sm:$0xff]  ;;  %v1930_v3 = vmul.f32 0.95122945, %v695_v57  ;;  %v1932_v6 = vmul.f32 0.95122945, %v677_v60  ;;  %v598_v9 = vld [vmem:[#allocation2 + $0xa8] sm:$0xff] }
  0x52   : > { %v600_v4 = vld [vmem:[#allocation2 + $0xb8] sm:$0xff]  ;;  %v1934_v7 = vmul.f32 0.95122945, %v693_v61  ;;  %v1936_v10 = vmul.f32 0.8187308, %v584_v0  ;;  %v678_v12 = vld [vmem:[#allocation3 + $0x28] sm:$0xff] }
  0x53   : > { %v696_v8 = vld [vmem:[#allocation3 + $0xb8] sm:$0xff]  ;;  %v1938_v11 = vmul.f32 0.95122945, %v680_v1  ;;  %v694_v13 = vld [vmem:[#allocation3 + $0xa8] sm:$0xff]  ;;  %v585_v20 = vld [vmem:[#allocation2 + $0x40] sm:$0xff] }
  0x54   : > { %v601_v21 = vld [vmem:[#allocation2 + $0xc0] sm:$0xff]  ;;  %v1948_v22 = vmul.f32 0.95122945, %v678_v12  ;;  %v1950_v23 = vmul.f32 0.95122945, %v694_v13  ;;  %v683_v24 = vld [vmem:[#allocation3 + $0x50] sm:$0xff] }
  0x55   : > { %v699_v26 = vld [vmem:[#allocation3 + $0xd0] sm:$0xff]  ;;  %v681_v31 = vld [vmem:[#allocation3 + $0x40] sm:$0xff]  ;;  %v1956_v35 = vmul.f32 0.8187308, %v585_v20  ;;  %v1958_v38 = vmul.f32 0.8187308, %v601_v21 }
  0x56   : > { %v697_v34 = vld [vmem:[#allocation3 + $0xc0] sm:$0xff]  ;;  %v588_v41 = vld [vmem:[#allocation2 + $0x58] sm:$0xff]  ;;  %v1960_v45 = vmul.f32 0.95122945, %v683_v24  ;;  %v1962_v46 = vmul.f32 0.95122945, %v699_v26 }
  0x57   : > { %v684_v42 = vld [vmem:[#allocation3 + $0x58] sm:$0xff]  ;;  %v586_v49 = vld [vmem:[#allocation2 + $0x48] sm:$0xff]  ;;  %v1964_v52 = vmul.f32 0.95122945, %v681_v31  ;;  %v1966_v53 = vmul.f32 0.95122945, %v697_v34 }
  0x58   : > { %1462 = vmatmul.mubr.msk.bf16.gmra.mrb[8].mxu0 %vm363_vm1, %v1578_v14  ;;  %1478 = vmatmul.mubr.msk.bf16.gmra.mrb[8].mxu1 %vm363_vm1, %v1579_v15  ;;  %v1940_v14 = vmul.f32 0.8187308, %v600_v4  ;;  %v1942_v15 = vmul.f32 0.8187308, %v582_v5  ;;  %v604_v48 = vld [vmem:[#allocation2 + $0xd8] sm:$0xff]  ;;  %v602_v57 = vld [vmem:[#allocation2 + $0xc8] sm:$0xff] }
  0x59   : > { %1465 = vmatprep.mubr.msk.bf16.mxu0 %vm363_vm1, %v1580_v16  ;;  %1481 = vmatprep.mubr.msk.bf16.mxu1 %vm363_vm1, %v1581_v17  ;;  %v587_v16 = vld [vmem:[#allocation2 + $0x50] sm:$0xff]  ;;  %v700_v56 = vld [vmem:[#allocation3 + $0xd8] sm:$0xff]  ;;  %v1968_v60 = vmul.f32 0.8187308, %v588_v41  ;;  %v1970_v61 = vmul.f32 0.95122945, %v684_v42 }
  0x5a   : > { %v603_v17 = vld [vmem:[#allocation2 + $0xd0] sm:$0xff]  ;;  %v1952_v27 = vmul.f32 0.8187308, %v587_v16  ;;  %v682_v0 = vld [vmem:[#allocation3 + $0x48] sm:$0xff]  ;;  %v1972_v4 = vmul.f32 0.8187308, %v604_v48 }
  0x5b   : > { %v1954_v30 = vmul.f32 0.8187308, %v603_v17  ;;  %2203 = vst [vmem:[#allocation7_spill] sm:$0xff] %v1970_v61  ;;  %v698_v1 = vld [vmem:[#allocation3 + $0xc8] sm:$0xff]  ;;  %v1974_v5 = vmul.f32 0.8187308, %v586_v49 }
  0x5c   : > { %v1976_v12 = vmul.f32 0.95122945, %v700_v56  ;;  %v1978_v13 = vmul.f32 0.8187308, %v602_v57  ;;  %v589_v16 = vld [vmem:[#allocation2 + $0x60] sm:$0xff]  ;;  %v687_v24 = vld [vmem:[#allocation3 + $0x70] sm:$0xff] }
  0x5d   : > { %v605_v17 = vld [vmem:[#allocation2 + $0xe0] sm:$0xff]  ;;  %v1980_v20 = vmul.f32 0.95122945, %v682_v0  ;;  %v1982_v21 = vmul.f32 0.95122945, %v698_v1  ;;  %v703_v26 = vld [vmem:[#allocation3 + $0xf0] sm:$0xff] }
  0x5e   : > { %2204 = vst [vmem:[#allocation8_spill] sm:$0xff] %v1976_v12  ;;  %v685_v41 = vld [vmem:[#allocation3 + $0x60] sm:$0xff]  ;;  %v1988_v48 = vmul.f32 0.8187308, %v589_v16  ;;  %v1990_v49 = vmul.f32 0.8187308, %v605_v17 }
  0x5f   : > { %2205 = vst [vmem:[#allocation9_spill] sm:$0xff] %v1980_v20  ;;  %2206 = vst [vmem:[#allocation10_spill] sm:$0xff] %v1982_v21  ;;  %v701_v42 = vld [vmem:[#allocation3 + $0xe0] sm:$0xff]  ;;  %v592_v56 = vld [vmem:[#allocation2 + $0x78] sm:$0xff]  ;;  %v1992_v12 = vmul.f32 0.95122945, %v687_v24 }
  0x60   : > { %1466 = vmatmul.mubr.msk.bf16.gmra.mrb[12].mxu0 %vm363_vm1, %v1582_v18  ;;  %1482 = vmatmul.mubr.msk.bf16.gmra.mrb[12].mxu1 %vm363_vm1, %v1583_v19  ;;  %v1944_v18 = vmul.f32 0.95122945, %v696_v8  ;;  %v1946_v19 = vmul.f32 0.8187308, %v598_v9  ;;  %v591_v8 = vld [vmem:[#allocation2 + $0x70] sm:$0xff]  ;;  %2209 = vst [vmem:[#allocation13_spill] sm:$0xff] %v1988_v48 }
  0x61   : > { %v607_v9 = vld [vmem:[#allocation2 + $0xf0] sm:$0xff]  ;;  %v1984_v31 = vmul.f32 0.8187308, %v591_v8  ;;  %2210 = vst [vmem:[#allocation14_spill] sm:$0xff] %v1990_v49  ;;  %v688_v57 = vld [vmem:[#allocation3 + $0x78] sm:$0xff]  ;;  %2211 = vst [vmem:[#allocation15_spill] sm:$0xff] %v1992_v12 }
  0x62   : > { %v1986_v34 = vmul.f32 0.8187308, %v607_v9  ;;  %v1994_v0 = vmul.f32 0.95122945, %v703_v26  ;;  %v608_v1 = vld [vmem:[#allocation2 + $0xf8] sm:$0xff]  ;;  %v590_v21 = vld [vmem:[#allocation2 + $0x68] sm:$0xff] }
  0x63   : > { %2207 = vst [vmem:[#allocation11_spill] sm:$0xff] %v1984_v31  ;;  %v1996_v20 = vmul.f32 0.95122945, %v685_v41  ;;  %v1998_v8 = vmul.f32 0.95122945, %v701_v42  ;;  %v704_v9 = vld [vmem:[#allocation3 + $0xf8] sm:$0xff] }
  0x64   : > { %2208 = vst [vmem:[#allocation12_spill] sm:$0xff] %v1986_v34  ;;  %2212 = vst [vmem:[#allocation16_spill] sm:$0xff] %v1994_v0  ;;  %v606_v34 = vld [vmem:[#allocation2 + $0xe8] sm:$0xff]  ;;  %v2000_v31 = vmul.f32 0.8187308, %v592_v56 }
  0x65   : > { %2213 = vst [vmem:[#allocation17_spill] sm:$0xff] %v1996_v20  ;;  %2214 = vst [vmem:[#allocation18_spill] sm:$0xff] %v1998_v8  ;;  %v2002_v16 = vmul.f32 0.95122945, %v688_v57  ;;  %v686_v17 = vld [vmem:[#allocation3 + $0x68] sm:$0xff] }
  0x66   : > { %2215 = vst [vmem:[#allocation19_spill] sm:$0xff] %v2000_v31  ;;  %v702_v49 = vld [vmem:[#allocation3 + $0xe8] sm:$0xff]  ;;  %v2004_v24 = vmul.f32 0.8187308, %v608_v1  ;;  %v2006_v26 = vmul.f32 0.8187308, %v590_v21 }
  0x67   : > { %2216 = vst [vmem:[#allocation20_spill] sm:$0xff] %v2002_v16  ;;  %v2010_v20 = vmul.f32 0.95122945, %v704_v9  ;;  %v2012_v56 = vmul.f32 0.8187308, %v606_v34 }
  0x68   : > { %v2016_v1 = vmul.f32 0.95122945, %v686_v17  ;;  %v2018_v21 = vmul.f32 0.95122945, %v702_v49 }
 0x11b   : > { %v1455_v48 = vpop.f32.mrb[0].mxu0  ;;  %v1471_v61 = vpop.f32.mrb[0].mxu1 }
 0x11c   : > { %v643_v0 = vadd.f32 %v1455_v48, %v1888_v25  ;;  %v659_v41 = vadd.f32 %v1471_v61, %v1890_v28  ;;  %v450_v42 = vpop.f32.mrb[1].mxu0  ;;  %v514_v8 = vpop.f32.mrb[1].mxu1 }
 0x11d   : > { %v641_v57 = vadd.f32 %v1892_v29, %v450_v42  ;;  %v657_v16 = vadd.f32 %v1896_v33, %v514_v8  ;;  %v1456_v31 = vpop.f32.mrb[2].mxu0  ;;  %v1472_v12 = vpop.f32.mrb[2].mxu1 }
 0x11e   : > { %v739_v25 = vadd.f32 %v1894_v32, %v643_v0  ;;  %867 = vst [vmem:[#allocation2 + $0x10] sm:$0xff] %v643_v0  ;;  %v755_v28 = vadd.f32 %v1898_v36, %v659_v41  ;;  %883 = vst [vmem:[#allocation2 + $0x90] sm:$0xff] %v659_v41  ;;  %v644_v61 = vadd.f32 %v1456_v31, %v1904_v40  ;;  %v453_v48 = vpop.f32.mrb[3].mxu0  ;;  %v517_v29 = vpop.f32.mrb[3].mxu1 }
 0x11f   : > { %v660_v34 = vadd.f32 %v1472_v12, %v1908_v44  ;;  %v737_v33 = vadd.f32 %v1900_v37, %v641_v57  ;;  %865 = vst [vmem:[#allocation2] sm:$0xff] %v641_v57  ;;  %v753_v8 = vadd.f32 %v1902_v39, %v657_v16  ;;  %881 = vst [vmem:[#allocation2 + $0x80] sm:$0xff] %v657_v16  ;;  %v1681_v44 = vmov 0.0  }
 0x120   : > { %v642_v49 = vadd.f32 %v1912_v50, %v453_v48  ;;  %v658_v32 = vadd.f32 %v1916_v54, %v517_v29  ;;  %vm771_vm2 = vcmp.ge.f32.partialorder %v739_v25, 1.0  ;;  %vm787_vm3 = vcmp.ge.f32.partialorder %v755_v28, 1.0  ;;  %868 = vst [vmem:[#allocation2 + $0x18] sm:$0xff] %v644_v61 }
 0x121   : > { %v740_v36 = vadd.f32 %v1906_v43, %v644_v61  ;;  %v756_v40 = vadd.f32 %v1910_v47, %v660_v34  ;;  %884 = vst [vmem:[#allocation2 + $0x98] sm:$0xff] %v660_v34  ;;  %v1268_v12 = vsel %vm771_vm2, 1.0, %v1681_v44  ;;  %v1284_v37 = vsel %vm787_vm3, 1.0, %v1681_v44 }
 0x122   : > { %vm769_vm4 = vcmp.ge.f32.partialorder %v737_v33, 1.0  ;;  %vm785_vm5 = vcmp.ge.f32.partialorder %v753_v8, 1.0  ;;  %866 = vst [vmem:[#allocation2 + $0x8] sm:$0xff] %v642_v49  ;;  %882 = vst [vmem:[#allocation2 + $0x88] sm:$0xff] %v658_v32  ;;  %v899_v39 = vsub.f32 %v739_v25, %v1268_v12  ;;  %v915_v50 = vsub.f32 %v755_v28, %v1284_v37 }
 0x123   : > { %v1266_v54 = vsel %vm769_vm4, 1.0, %v1681_v44  ;;  %v1282_v31 = vsel %vm785_vm5, 1.0, %v1681_v44  ;;  %vm772_vm6 = vcmp.ge.f32.partialorder %v740_v36, 1.0  ;;  %vm788_vm7 = vcmp.ge.f32.partialorder %v756_v40, 1.0  ;;  %v1459_v47 = vpop.f32.mrb[4].mxu0  ;;  %v1475_v9 = vpop.f32.mrb[4].mxu1 }
 0x124   : > { %v897_v43 = vsub.f32 %v737_v33, %v1266_v54  ;;  %v913_v0 = vsub.f32 %v753_v8, %v1282_v31  ;;  %931 = vst [vmem:[#allocation3 + $0x10] sm:$0xff] %v899_v39  ;;  %947 = vst [vmem:[#allocation3 + $0x90] sm:$0xff] %v915_v50  ;;  %v1269_v16 = vsel %vm772_vm6, 1.0, %v1681_v44  ;;  %v1285_v17 = vsel %vm788_vm7, 1.0, %v1681_v44  ;;  %v466_v57 = vpop.f32.mrb[5].mxu0  ;;  %v530_v25 = vpop.f32.mrb[5].mxu1 }
 0x125   : > { %v738_v41 = vadd.f32 %v1914_v51, %v642_v49  ;;  %v754_v42 = vadd.f32 %v1918_v55, %v658_v32  ;;  %v900_v28 = vsub.f32 %v740_v36, %v1269_v16  ;;  %v1372_v61 = vpack.c.bf16 %v1269_v16, %v1268_v12  ;;  %v1460_v29 = vpop.f32.mrb[6].mxu0  ;;  %v1476_v33 = vpop.f32.mrb[6].mxu1 }
 0x126   : > { %929 = vst [vmem:[#allocation3] sm:$0xff] %v897_v43  ;;  %945 = vst [vmem:[#allocation3 + $0x80] sm:$0xff] %v913_v0  ;;  %v916_v34 = vsub.f32 %v756_v40, %v1285_v17  ;;  %v1396_v48 = vpack.c.bf16 %v1285_v17, %v1284_v37  ;;  %v647_v8 = vadd.f32 %v1459_v47, %v1920_v58  ;;  %v469_v49 = vpop.f32.mrb[7].mxu0  ;;  %v533_v55 = vpop.f32.mrb[7].mxu1 }
 0x127   : > { %vm770_vm8 = vcmp.ge.f32.partialorder %v738_v41, 1.0  ;;  %vm786_vm9 = vcmp.ge.f32.partialorder %v754_v42, 1.0  ;;  %v663_v51 = vadd.f32 %v1475_v9, %v1922_v59  ;;  %932 = vst [vmem:[#allocation3 + $0x18] sm:$0xff] %v900_v28  ;;  %1416 = vst [vmem:[%s1783_s21 + $0x8] sm:$0xff] %v1372_v61   ;;  %v645_v40 = vadd.f32 %v1924_v62, %v466_v57 }
 0x128   : > { %948 = vst [vmem:[#allocation3 + $0x98] sm:$0xff] %v916_v34  ;;  %1424 = vst [vmem:[%s1783_s21 + $0x48] sm:$0xff] %v1396_v48   ;;  %v1267_v32 = vsel %vm770_vm8, 1.0, %v1681_v44  ;;  %v1283_v36 = vsel %vm786_vm9, 1.0, %v1681_v44  ;;  %v661_v12 = vadd.f32 %v1926_v63, %v530_v25  ;;  %v743_v50 = vadd.f32 %v1928_v2, %v647_v8 }
 0x129   : > { %v898_v37 = vsub.f32 %v738_v41, %v1267_v32  ;;  %v1369_v58 = vpack.c.bf16 %v1267_v32, %v1266_v54  ;;  %v914_v39 = vsub.f32 %v754_v42, %v1283_v36  ;;  %v1393_v59 = vpack.c.bf16 %v1283_v36, %v1282_v31  ;;  %871 = vst [vmem:[#allocation2 + $0x30] sm:$0xff] %v647_v8 }
 0x12a   : > { %887 = vst [vmem:[#allocation2 + $0xb0] sm:$0xff] %v663_v51  ;;  %v759_v43 = vadd.f32 %v1930_v3, %v663_v51  ;;  %v741_v0 = vadd.f32 %v1932_v6, %v645_v40  ;;  %869 = vst [vmem:[#allocation2 + $0x20] sm:$0xff] %v645_v40  ;;  %v757_v47 = vadd.f32 %v1934_v7, %v661_v12  ;;  %vm775_vm10 = vcmp.ge.f32.partialorder %v743_v50, 1.0 }
 0x12b   : > { %885 = vst [vmem:[#allocation2 + $0xa0] sm:$0xff] %v661_v12  ;;  %930 = vst [vmem:[#allocation3 + $0x8] sm:$0xff] %v898_v37  ;;  %v648_v62 = vadd.f32 %v1460_v29, %v1936_v10  ;;  %v664_v63 = vadd.f32 %v1476_v33, %v1940_v14  ;;  %v646_v54 = vadd.f32 %v1942_v15, %v469_v49  ;;  %v1463_v3 = vpop.f32.mrb[8].mxu0  ;;  %v1479_v6 = vpop.f32.mrb[8].mxu1  ;;  %v1272_v7 = vsel %vm775_vm10, 1.0, %v1681_v44 }
 0x12c   : > { %1370 = vst [vmem:[%s1783_s21] sm:$0xff] %v1369_v58   ;;  %946 = vst [vmem:[#allocation3 + $0x88] sm:$0xff] %v914_v39  ;;  %v662_v2 = vadd.f32 %v1946_v19, %v533_v55  ;;  %vm791_vm11 = vcmp.ge.f32.partialorder %v759_v43, 1.0  ;;  %vm773_vm12 = vcmp.ge.f32.partialorder %v741_v0, 1.0  ;;  %vm789_vm13 = vcmp.ge.f32.partialorder %v757_v47, 1.0  ;;  %v482_v14 = vpop.f32.mrb[9].mxu0  ;;  %v546_v15 = vpop.f32.mrb[9].mxu1 }
 0x12d   : > { %1423 = vst [vmem:[%s1783_s21 + $0x40] sm:$0xff] %v1393_v59   ;;  %v1288_v31 = vsel %vm791_vm11, 1.0, %v1681_v44  ;;  %v1270_v9 = vsel %vm773_vm12, 1.0, %v1681_v44  ;;  %v1286_v10 = vsel %vm789_vm13, 1.0, %v1681_v44  ;;  %872 = vst [vmem:[#allocation2 + $0x38] sm:$0xff] %v648_v62  ;;  %v903_v19 = vsub.f32 %v743_v50, %v1272_v7  ;;  %v1464_v42 = vpop.f32.mrb[10].mxu0 }
 0x12e   : > { %888 = vst [vmem:[#allocation2 + $0xb8] sm:$0xff] %v664_v63  ;;  %870 = vst [vmem:[#allocation2 + $0x28] sm:$0xff] %v646_v54  ;;  %v919_v16 = vsub.f32 %v759_v43, %v1288_v31  ;;  %v901_v17 = vsub.f32 %v741_v0, %v1270_v9  ;;  %v917_v41 = vsub.f32 %v757_v47, %v1286_v10  ;;  %v1480_v57 = vpop.f32.mrb[10].mxu1  ;;  %v485_v48 = vpop.f32.mrb[11].mxu0 }
 0x12f   : > { %886 = vst [vmem:[#allocation2 + $0xa8] sm:$0xff] %v662_v2  ;;  %v744_v25 = vadd.f32 %v1938_v11, %v648_v62  ;;  %v760_v28 = vadd.f32 %v1944_v18, %v664_v63  ;;  %v742_v61 = vadd.f32 %v1948_v22, %v646_v54  ;;  %v758_v34 = vadd.f32 %v1950_v23, %v662_v2  ;;  %v549_v29 = vpop.f32.mrb[11].mxu1 }
 0x130   : > { %935 = vst [vmem:[#allocation3 + $0x30] sm:$0xff] %v903_v19  ;;  %951 = vst [vmem:[#allocation3 + $0xb0] sm:$0xff] %v919_v16  ;;  %v651_v33 = vadd.f32 %v1463_v3, %v1952_v27  ;;  %v667_v8 = vadd.f32 %v1479_v6, %v1954_v30  ;;  %v649_v51 = vadd.f32 %v1956_v35, %v482_v14  ;;  %v2220_v16 = vld [vmem:[#allocation10_spill] sm:$0xff] }
 0x131   : > { %933 = vst [vmem:[#allocation3 + $0x20] sm:$0xff] %v901_v17  ;;  %949 = vst [vmem:[#allocation3 + $0xa0] sm:$0xff] %v917_v41  ;;  %v665_v11 = vadd.f32 %v1958_v38, %v546_v15  ;;  %vm776_vm14 = vcmp.ge.f32.partialorder %v744_v25, 1.0  ;;  %vm792_vm15 = vcmp.ge.f32.partialorder %v760_v28, 1.0  ;;  %vm774_vm0 = vcmp.ge.f32.partialorder %v742_v61, 1.0  ;;  %v2219_v15 = vld [vmem:[#allocation9_spill] sm:$0xff] }
 0x132   : > { %vm790_vm1 = vcmp.ge.f32.partialorder %v758_v34, 1.0  ;;  %v1273_v18 = vsel %vm776_vm14, 1.0, %v1681_v44  ;;  %v1289_v22 = vsel %vm792_vm15, 1.0, %v1681_v44  ;;  %v1271_v23 = vsel %vm774_vm0, 1.0, %v1681_v44  ;;  %875 = vst [vmem:[#allocation2 + $0x50] sm:$0xff] %v651_v33  ;;  %891 = vst [vmem:[#allocation2 + $0xd0] sm:$0xff] %v667_v8 }
 0x133   : > { %v1287_v49 = vsel %vm790_vm1, 1.0, %v1681_v44  ;;  %873 = vst [vmem:[#allocation2 + $0x40] sm:$0xff] %v649_v51  ;;  %889 = vst [vmem:[#allocation2 + $0xc0] sm:$0xff] %v665_v11  ;;  %v904_v27 = vsub.f32 %v744_v25, %v1273_v18  ;;  %v1378_v30 = vpack.c.bf16 %v1273_v18, %v1272_v7  ;;  %v920_v35 = vsub.f32 %v760_v28, %v1289_v22  ;;  %v1467_v12 = vpop.f32.mrb[12].mxu0  ;;  %v1483_v37 = vpop.f32.mrb[12].mxu1  ;;  %v2221_v41 = vld [vmem:[#allocation11_spill] sm:$0xff] }
 0x134   : > { %v1402_v38 = vpack.c.bf16 %v1289_v22, %v1288_v31  ;;  %v902_v55 = vsub.f32 %v742_v61, %v1271_v23  ;;  %v1375_v32 = vpack.c.bf16 %v1271_v23, %v1270_v9  ;;  %v918_v36 = vsub.f32 %v758_v34, %v1287_v49  ;;  %v498_v43 = vpop.f32.mrb[13].mxu0  ;;  %v562_v0 = vpop.f32.mrb[13].mxu1  ;;  %v2217_v31 = vld [vmem:[#allocation7_spill] sm:$0xff]  ;;  %v2223_v28 = vld [vmem:[#allocation13_spill] sm:$0xff]  ;;  %v2224_v34 = vld [vmem:[#allocation14_spill] sm:$0xff] }
 0x135   : > { %v1399_v40 = vpack.c.bf16 %v1287_v49, %v1286_v10  ;;  %936 = vst [vmem:[#allocation3 + $0x38] sm:$0xff] %v904_v27  ;;  %1418 = vst [vmem:[%s1783_s21 + $0x18] sm:$0xff] %v1378_v30   ;;  %v747_v58 = vadd.f32 %v1960_v45, %v651_v33  ;;  %v763_v39 = vadd.f32 %v1962_v46, %v667_v8  ;;  %v2084_v54 = vpop.f32.mrb[14].mxu0  ;;  %v2086_v46 = vpop.f32.mrb[14].mxu1  ;;  %v2218_v10 = vld [vmem:[#allocation8_spill] sm:$0xff] }
 0x136   : > { %952 = vst [vmem:[#allocation3 + $0xb8] sm:$0xff] %v920_v35  ;;  %1426 = vst [vmem:[%s1783_s21 + $0x58] sm:$0xff] %v1402_v38   ;;  %v745_v59 = vadd.f32 %v1964_v52, %v649_v51  ;;  %v761_v50 = vadd.f32 %v1966_v53, %v665_v11  ;;  %v652_v47 = vadd.f32 %v1464_v42, %v1968_v60  ;;  %v501_v52 = vpop.f32.mrb[15].mxu0  ;;  %v565_v53 = vpop.f32.mrb[15].mxu1  ;;  %v2225_v38 = vld [vmem:[#allocation15_spill] sm:$0xff] }
 0x137   : > { %934 = vst [vmem:[#allocation3 + $0x28] sm:$0xff] %v902_v55  ;;  %1417 = vst [vmem:[%s1783_s21 + $0x10] sm:$0xff] %v1375_v32   ;;  %v668_v62 = vadd.f32 %v1480_v57, %v1972_v4  ;;  %v650_v63 = vadd.f32 %v1974_v5, %v485_v48  ;;  %v666_v45 = vadd.f32 %v1978_v13, %v549_v29  ;;  %vm779_vm2 = vcmp.ge.f32.partialorder %v747_v58, 1.0  ;;  %v2222_v57 = vld [vmem:[#allocation12_spill] sm:$0xff] }
 0x138   : > { %950 = vst [vmem:[#allocation3 + $0xa8] sm:$0xff] %v918_v36  ;;  %1425 = vst [vmem:[%s1783_s21 + $0x50] sm:$0xff] %v1399_v40   ;;  %vm795_vm3 = vcmp.ge.f32.partialorder %v763_v39, 1.0  ;;  %vm777_vm4 = vcmp.ge.f32.partialorder %v745_v59, 1.0  ;;  %vm793_vm5 = vcmp.ge.f32.partialorder %v761_v50, 1.0  ;;  %v1276_v2 = vsel %vm779_vm2, 1.0, %v1681_v44 }
 0x139   : > { %v1292_v60 = vsel %vm795_vm3, 1.0, %v1681_v44  ;;  %v1274_v4 = vsel %vm777_vm4, 1.0, %v1681_v44  ;;  %v1290_v5 = vsel %vm793_vm5, 1.0, %v1681_v44  ;;  %876 = vst [vmem:[#allocation2 + $0x58] sm:$0xff] %v652_v47  ;;  %892 = vst [vmem:[#allocation2 + $0xd8] sm:$0xff] %v668_v62  ;;  %v907_v13 = vsub.f32 %v747_v58, %v1276_v2  ;;  %v2226_v32 = vld [vmem:[#allocation16_spill] sm:$0xff] }
 0x13a   : > { %874 = vst [vmem:[#allocation2 + $0x48] sm:$0xff] %v650_v63  ;;  %890 = vst [vmem:[#allocation2 + $0xc8] sm:$0xff] %v666_v45  ;;  %v923_v3 = vsub.f32 %v763_v39, %v1292_v60  ;;  %v905_v6 = vsub.f32 %v745_v59, %v1274_v4  ;;  %v921_v7 = vsub.f32 %v761_v50, %v1290_v5  ;;  %v2227_v40 = vld [vmem:[#allocation17_spill] sm:$0xff]  ;;  %v2229_v39 = vld [vmem:[#allocation19_spill] sm:$0xff] }
 0x13b   : > { %v748_v9 = vadd.f32 %v2217_v31, %v652_v47  ;;  %v764_v14 = vadd.f32 %v2218_v10, %v668_v62  ;;  %v746_v19 = vadd.f32 %v2219_v15, %v650_v63  ;;  %v762_v17 = vadd.f32 %v2220_v16, %v666_v45  ;;  %939 = vst [vmem:[#allocation3 + $0x50] sm:$0xff] %v907_v13 }
 0x13c   : > { %955 = vst [vmem:[#allocation3 + $0xd0] sm:$0xff] %v923_v3  ;;  %937 = vst [vmem:[#allocation3 + $0x40] sm:$0xff] %v905_v6  ;;  %v655_v42 = vadd.f32 %v1467_v12, %v2221_v41  ;;  %v671_v25 = vadd.f32 %v1483_v37, %v2222_v57  ;;  %v653_v61 = vadd.f32 %v2223_v28, %v498_v43  ;;  %v2228_v37 = vld [vmem:[#allocation18_spill] sm:$0xff] }
 0x13d   : > { %953 = vst [vmem:[#allocation3 + $0xc0] sm:$0xff] %v921_v7  ;;  %v669_v48 = vadd.f32 %v2224_v34, %v562_v0  ;;  %vm780_vm6 = vcmp.ge.f32.partialorder %v748_v9, 1.0  ;;  %vm796_vm7 = vcmp.ge.f32.partialorder %v764_v14, 1.0  ;;  %vm778_vm8 = vcmp.ge.f32.partialorder %v746_v19, 1.0 }
 0x13e   : > { %vm794_vm9 = vcmp.ge.f32.partialorder %v762_v17, 1.0  ;;  %v1277_v29 = vsel %vm780_vm6, 1.0, %v1681_v44  ;;  %v1293_v33 = vsel %vm796_vm7, 1.0, %v1681_v44  ;;  %v1275_v8 = vsel %vm778_vm8, 1.0, %v1681_v44  ;;  %879 = vst [vmem:[#allocation2 + $0x70] sm:$0xff] %v655_v42  ;;  %895 = vst [vmem:[#allocation2 + $0xf0] sm:$0xff] %v671_v25 }
 0x13f   : > { %v1291_v51 = vsel %vm794_vm9, 1.0, %v1681_v44  ;;  %877 = vst [vmem:[#allocation2 + $0x60] sm:$0xff] %v653_v61  ;;  %893 = vst [vmem:[#allocation2 + $0xe0] sm:$0xff] %v669_v48  ;;  %v908_v11 = vsub.f32 %v748_v9, %v1277_v29  ;;  %v1384_v18 = vpack.c.bf16 %v1277_v29, %v1276_v2  ;;  %v924_v22 = vsub.f32 %v764_v14, %v1293_v33 }
 0x140   : > { %v1408_v23 = vpack.c.bf16 %v1293_v33, %v1292_v60  ;;  %v906_v49 = vsub.f32 %v746_v19, %v1275_v8  ;;  %v1381_v27 = vpack.c.bf16 %v1275_v8, %v1274_v4  ;;  %v922_v30 = vsub.f32 %v762_v17, %v1291_v51 }
 0x141   : > { %v1405_v35 = vpack.c.bf16 %v1291_v51, %v1290_v5  ;;  %940 = vst [vmem:[#allocation3 + $0x58] sm:$0xff] %v908_v11  ;;  %1420 = vst [vmem:[%s1783_s21 + $0x28] sm:$0xff] %v1384_v18   ;;  %v751_v55 = vadd.f32 %v2225_v38, %v655_v42  ;;  %v767_v36 = vadd.f32 %v2226_v32, %v671_v25 }
 0x142   : > { %956 = vst [vmem:[#allocation3 + $0xd8] sm:$0xff] %v924_v22  ;;  %1428 = vst [vmem:[%s1783_s21 + $0x68] sm:$0xff] %v1408_v23   ;;  %v749_v12 = vadd.f32 %v2227_v40, %v653_v61  ;;  %v765_v58 = vadd.f32 %v2228_v37, %v669_v48  ;;  %v656_v59 = vadd.f32 %v2084_v54, %v2229_v39 }
 0x143   : > { %938 = vst [vmem:[#allocation3 + $0x48] sm:$0xff] %v906_v49  ;;  %1419 = vst [vmem:[%s1783_s21 + $0x20] sm:$0xff] %v1381_v27   ;;  %v672_v50 = vadd.f32 %v2086_v46, %v2004_v24  ;;  %v654_v43 = vadd.f32 %v2006_v26, %v501_v52  ;;  %v670_v0 = vadd.f32 %v2012_v56, %v565_v53  ;;  %vm783_vm10 = vcmp.ge.f32.partialorder %v751_v55, 1.0  ;;  %v2230_v46 = vld [vmem:[#allocation20_spill] sm:$0xff] }
 0x144   : > { %954 = vst [vmem:[#allocation3 + $0xc8] sm:$0xff] %v922_v30  ;;  %1427 = vst [vmem:[%s1783_s21 + $0x60] sm:$0xff] %v1405_v35   ;;  %vm799_vm11 = vcmp.ge.f32.partialorder %v767_v36, 1.0  ;;  %vm781_vm12 = vcmp.ge.f32.partialorder %v749_v12, 1.0  ;;  %vm797_vm13 = vcmp.ge.f32.partialorder %v765_v58, 1.0  ;;  %v1280_v47 = vsel %vm783_vm10, 1.0, %v1681_v44 }
 0x145   : > { %v1296_v62 = vsel %vm799_vm11, 1.0, %v1681_v44  ;;  %v1278_v63 = vsel %vm781_vm12, 1.0, %v1681_v44  ;;  %v1294_v45 = vsel %vm797_vm13, 1.0, %v1681_v44  ;;  %880 = vst [vmem:[#allocation2 + $0x78] sm:$0xff] %v656_v59  ;;  %896 = vst [vmem:[#allocation2 + $0xf8] sm:$0xff] %v672_v50  ;;  %v911_v24 = vsub.f32 %v751_v55, %v1280_v47 }
 0x146   : > { %878 = vst [vmem:[#allocation2 + $0x68] sm:$0xff] %v654_v43  ;;  %894 = vst [vmem:[#allocation2 + $0xe8] sm:$0xff] %v670_v0  ;;  %v927_v26 = vsub.f32 %v767_v36, %v1296_v62  ;;  %v909_v56 = vsub.f32 %v749_v12, %v1278_v63  ;;  %v925_v54 = vsub.f32 %v765_v58, %v1294_v45 }
 0x147   : > { %v752_v52 = vadd.f32 %v2230_v46, %v656_v59  ;;  %v768_v53 = vadd.f32 %v2010_v20, %v672_v50  ;;  %v750_v2 = vadd.f32 %v2016_v1, %v654_v43  ;;  %v766_v60 = vadd.f32 %v2018_v21, %v670_v0  ;;  %943 = vst [vmem:[#allocation3 + $0x70] sm:$0xff] %v911_v24 }
 0x148   : > { %959 = vst [vmem:[#allocation3 + $0xf0] sm:$0xff] %v927_v26  ;;  %941 = vst [vmem:[#allocation3 + $0x60] sm:$0xff] %v909_v56 }
 0x149   : > { %957 = vst [vmem:[#allocation3 + $0xe0] sm:$0xff] %v925_v54  ;;  %vm784_vm14 = vcmp.ge.f32.partialorder %v752_v52, 1.0  ;;  %vm800_vm15 = vcmp.ge.f32.partialorder %v768_v53, 1.0  ;;  %vm782_vm0 = vcmp.ge.f32.partialorder %v750_v2, 1.0  ;;  %vm798_vm1 = vcmp.ge.f32.partialorder %v766_v60, 1.0 }
 0x14a   : > { %v1281_v4 = vsel %vm784_vm14, 1.0, %v1681_v44  ;;  %v1297_v5 = vsel %vm800_vm15, 1.0, %v1681_v44  ;;  %v1279_v20 = vsel %vm782_vm0, 1.0, %v1681_v44  ;;  %v1295_v1 = vsel %vm798_vm1, 1.0, %v1681_v44 }
 0x14b   : > { %v912_v21 = vsub.f32 %v752_v52, %v1281_v4  ;;  %v1390_v13 = vpack.c.bf16 %v1281_v4, %v1280_v47  ;;  %v928_v3 = vsub.f32 %v768_v53, %v1297_v5  ;;  %v1414_v6 = vpack.c.bf16 %v1297_v5, %v1296_v62 }
 0x14c   : > { %v910_v7 = vsub.f32 %v750_v2, %v1279_v20  ;;  %v1387_v31 = vpack.c.bf16 %v1279_v20, %v1278_v63  ;;  %v926_v44 = vsub.f32 %v766_v60, %v1295_v1  ;;  %v1411_v9 = vpack.c.bf16 %v1295_v1, %v1294_v45 }
 0x14d   : > { %944 = vst [vmem:[#allocation3 + $0x78] sm:$0xff] %v912_v21  ;;  %1422 = vst [vmem:[%s1783_s21 + $0x38] sm:$0xff] %v1390_v13  }
 0x14e   : > { %960 = vst [vmem:[#allocation3 + $0xf8] sm:$0xff] %v928_v3  ;;  %1430 = vst [vmem:[%s1783_s21 + $0x78] sm:$0xff] %v1414_v6  }
 0x14f   : > { %942 = vst [vmem:[#allocation3 + $0x68] sm:$0xff] %v910_v7  ;;  %1421 = vst [vmem:[%s1783_s21 + $0x30] sm:$0xff] %v1387_v31  }
 0x150   : > { %958 = vst [vmem:[#allocation3 + $0xe8] sm:$0xff] %v926_v44  ;;  %1429 = vst [vmem:[%s1783_s21 + $0x70] sm:$0xff] %v1411_v9  }
 0x151   : > { %1597 = shalt.err (!%p1594_p9)
}
 0x152   : > { %s1598_s28 = scalar_lea.hbm %s2136_s7, 2048  ;;  %s1602_s29 = scalar_lea.hbm %s2200_s2, 32768 }
 0x153   : > { %p1599_p10 = scmp.ne.s32.totalorder %s2136_s7, %s1598_s28  ;;  %p1603_p13 = scmp.lt.u32.totalorder %s2136_s7, %s2200_s2 }
 0x154   : > { %p1604_p0 = scmp.lt.u32.totalorder %s1602_s29, %s1598_s28  ;;  %p1606_p2 = scmp.lt.u32.totalorder %s1598_s28, %s2136_s7 }
 0x155   : > { %p1600_p11 = pnand %p1599_p10, %p1751_p3 }
 0x156   : > { %p1605_p1 = por %p1604_p0, %p1603_p13 }
 0x157   : > { %p1601_p12 = pneg %p1600_p11 }
 0x158   : > { %p1607_p4 = por %p1606_p2, %p1605_p1 }
 0x15a   : > { %p1608_p5 = pnand %p1607_p4, %p1601_p12 }
 0x15c   : > { %1611 = shalt.err (!%p1608_p5)
}
 0x15d   : > { %s1683_s12 = smov 64   ;;  %s1684_s13 = smov 4  }
 0x15e   : > { %1491 = dma.vmem_to_hbm [thread:$0]  (%p1751_p3), %s2138_s4, 2048, %s2136_s7, %s2146_s8, %s1683_s12, %s1683_s12, %s1684_s13  }
 0x15f PF: > { %p1497_p6 = scmp.ge.s32.totalorder %s1678_s16, 2  ;;  %s1152_s5 = sand.u32 1, %s1650_s9  }
 0x160   : > { %s1153_s6 = scalar_lea.sflag [#allocation5], %s1152_s5 }
 0x161   : > { %p1494_p7 = pnand %p1497_p6, %p1760_p8 }
 0x163   : > { %1645 = dma.done.wait (!%p1494_p7), %s1153_s6, 2048  }
 0x164   : > { %1647 = vsyncadd (!%p1494_p7), %s1153_s6, 4294965248  ;;  %s15_s16 = sadd.s32 1, %s1678_s16   ;;  %s2231_s9 = smov %s1654_s10 }
 0x165   : > { %p12_p9 = scmp.ge.s32.totalorder %s15_s16, 18   ;;  %s2232_s10 = smov %s1658_s11 }
 0x166   : > { %s2233_s11 = smov %s1769_s27  ;;  %s2234_s12 = smov %s1670_s14 }
 0x167   : > { %s2235_s13 = smov %s1674_s15  ;;  %s2236_s14 = smov %s2239_s19 }
 0x168   : > { %s2237_s15 = smov %s2243_s20  ;;  %14 = sbr.rel (!%p12_p9) target bundleno = 5 (0x5), region = 67 }
 0x16f   :  { %1158 = vsyncpa [#allocation5], 1 }
 0x170   :  { %1160 = vsyncpa [#allocation5 + $0x1], 1 }

</bundles_post_ra>
